<compile_context>
chip_gen: v5e
topology: v5e:2x2
jax: 0.10.0
libtpu: 0.0.40
codegen_flags: <defaults>
</compile_context>

<pallas_src>
import jax
import jax.numpy as jnp
from jax.experimental import pallas as pl
from jax.experimental.pallas import tpu as pltpu


LOG_STD_MIN = -20.0
LOG_STD_MAX = 2.0
H1 = 256   # fc1 output width (from the PyTorch module)
H2 = 128   # fc2 output width


def _round_up(x, m):
    return ((x + m - 1) // m) * m


def actor_kernel(s_ref, w1_ref, b1_ref, w2_ref, b2_ref, wh_ref, bh_ref,
                 lo_ref, hi_ref, out_ref):
    """fc1+ReLU -> fc2+ReLU -> fused (mean || log_std) head with per-column clamp."""
    x = s_ref[...].astype(jnp.bfloat16)                                     # (TB, S)

    # fc1 + ReLU -> (TB, 256); bf16 MXU matmul, f32 accumulation, f32 epilogue,
    # then cast back to bf16 immediately so the live value is half-size.
    h1 = jnp.maximum(
        jnp.dot(x, w1_ref[...], preferred_element_type=jnp.float32) + b1_ref[...],
        0.0).astype(jnp.bfloat16)

    # fc2 + ReLU -> (TB, 128)
    h2 = jnp.maximum(
        jnp.dot(h1, w2_ref[...], preferred_element_type=jnp.float32) + b2_ref[...],
        0.0).astype(jnp.bfloat16)

    # Fused heads -> (TB, 2*half). Columns [0, A) hold mean, [half, half+A) hold
    # log_std.  Per-column clamp: mean half sees (-inf, +inf) bounds (no-op),
    # log_std half sees [-20, 2].
    head = jnp.dot(h2, wh_ref[...], preferred_element_type=jnp.float32) + bh_ref[...]
    head = jnp.minimum(jnp.maximum(head, lo_ref[...]), hi_ref[...])

    out_ref[...] = head.astype(out_ref.dtype)                               # bf16 store


def pack_actor_params(params):
    """Fuse mean/log_std heads into one lane-dense matmul; cast weights to bf16."""
    action_dim = params["wm"].shape[1]
    half = _round_up(action_dim, 64)          # fused head width = 2*half, multiple of 128
    width = 2 * half

    wh = jnp.zeros((H2, width), jnp.float32)
    wh = wh.at[:, :action_dim].set(params["wm"])
    wh = wh.at[:, half:half + action_dim].set(params["ws"])
    bh = jnp.zeros((1, width), jnp.float32)
    bh = bh.at[:, :action_dim].set(params["bm"])
    bh = bh.at[:, half:half + action_dim].set(params["bs"])

    # Per-column clamp bounds: mean half unclamped, log_std half clamped to [-20, 2].
    lo = jnp.concatenate([jnp.full((1, half), -jnp.inf, jnp.float32),
                          jnp.full((1, half), LOG_STD_MIN, jnp.float32)], axis=1)
    hi = jnp.concatenate([jnp.full((1, half), jnp.inf, jnp.float32),
                          jnp.full((1, half), LOG_STD_MAX, jnp.float32)], axis=1)

    return dict(
        w1=params["w1"].astype(jnp.bfloat16), b1=params["b1"],
        w2=params["w2"].astype(jnp.bfloat16), b2=params["b2"],
        wh=wh.astype(jnp.bfloat16), bh=bh, lo=lo, hi=hi,
        action_dim=int(action_dim), head_half=int(half))


def actor_forward(state, packed, *, tile_b=1024):
    """Batched forward: ragged grid over the batch axis, weights VMEM-resident."""
    B, S = state.shape
    A = packed["action_dim"]
    half = packed["head_half"]
    width = 2 * half

    # Batch tile: multiple of 16 (bf16 output sublane tile), capped at tile_b,
    # and sized so large batches give >= 2 grid steps (v7x dual-TensorCore).
    tb = min(_round_up(tile_b, 16),
             _round_up(pl.cdiv(_round_up(B, 16), 2), 16))
    tb = max(tb, 16)
    grid = (pl.cdiv(B, tb),)   # ragged last block: OOB rows are masked on writeback

    flops = 2 * B * (S * H1 + H1 * H2 + H2 * width)
    bytes_accessed = (B * S * state.dtype.itemsize      # state read
                      + B * width * 2                   # bf16 output writeback
                      + (S * H1 + H1 * H2 + H2 * width) * 2   # bf16 weights
                      + (H1 + H2 + 3 * width) * 4)      # f32 biases + clamp bounds

    resident = lambda i: (0, 0)   # same block every step -> no re-DMA, stays in VMEM

    out = pl.pallas_call(
        actor_kernel,
        out_shape=jax.ShapeDtypeStruct((B, width), jnp.bfloat16),
        grid=grid,
        in_specs=[
            pl.BlockSpec((tb, S), lambda i: (i, 0)),   # state: tiled over batch
            pl.BlockSpec((S, H1), resident),           # w1 (bf16)
            pl.BlockSpec((1, H1), resident),           # b1 (f32, VMEM row)
            pl.BlockSpec((H1, H2), resident),          # w2 (bf16)
            pl.BlockSpec((1, H2), resident),           # b2
            pl.BlockSpec((H2, width), resident),       # fused head weight (bf16)
            pl.BlockSpec((1, width), resident),        # fused head bias
            pl.BlockSpec((1, width), resident),        # per-column lower bound
            pl.BlockSpec((1, width), resident),        # per-column upper bound
        ],
        out_specs=pl.BlockSpec((tb, width), lambda i: (i, 0)),
        compiler_params=pltpu.CompilerParams(
            dimension_semantics=("parallel",),         # shard batch across TCs on v7x
            vmem_limit_bytes=32 * 1024 * 1024),        # headroom for big tiles (v5e default is 16 MiB)
        cost_estimate=pl.CostEstimate(
            flops=flops, transcendentals=0, bytes_accessed=bytes_accessed),
    )(state,
      packed["w1"], packed["b1"],
      packed["w2"], packed["b2"],
      packed["wh"], packed["bh"],
      packed["lo"], packed["hi"])

    mean = out[:, :A].astype(jnp.float32)
    log_std = out[:, half:half + A].astype(jnp.float32)
    return mean, log_std


def init_actor_params(key, state_dim, action_dim):
    """Deterministic init mimicking nn.Linear's U(-1/sqrt(fan_in), 1/sqrt(fan_in))."""
    def linear(k, fan_in, fan_out):
        kw, kb = jax.random.split(k)
        bound = 1.0 / jnp.sqrt(fan_in)
        w = jax.random.uniform(kw, (fan_in, fan_out), jnp.float32, -bound, bound)
        b = jax.random.uniform(kb, (1, fan_out), jnp.float32, -bound, bound)
        return w, b

    k1, k2, k3, k4 = jax.random.split(key, 4)
    w1, b1 = linear(k1, state_dim, H1)
    w2, b2 = linear(k2, H1, H2)
    wm, bm = linear(k3, H2, action_dim)
    ws, bs = linear(k4, H2, action_dim)
    return dict(w1=w1, b1=b1, w2=w2, b2=b2, wm=wm, bm=bm, ws=ws, bs=bs)


def actor_forward_ref_f32(state, p):
    """Pure-f32 JAX reference."""
    h1 = jnp.maximum(state @ p["w1"] + p["b1"], 0.0)
    h2 = jnp.maximum(h1 @ p["w2"] + p["b2"], 0.0)
    mean = h2 @ p["wm"] + p["bm"]
    log_std = jnp.clip(h2 @ p["ws"] + p["bs"], LOG_STD_MIN, LOG_STD_MAX)
    return mean, log_std


def actor_forward_ref_bf16(state, p):
    """Reference emulating the kernel's dtypes (bf16 operands, f32 accumulation)."""
    bf, f32 = jnp.bfloat16, jnp.float32
    h1 = jnp.maximum(
        jnp.dot(state.astype(bf), p["w1"].astype(bf), preferred_element_type=f32)
        + p["b1"], 0.0)
    h2 = jnp.maximum(
        jnp.dot(h1.astype(bf), p["w2"].astype(bf), preferred_element_type=f32)
        + p["b2"], 0.0)
    mean = jnp.dot(h2.astype(bf), p["wm"].astype(bf), preferred_element_type=f32) + p["bm"]
    log_std = jnp.clip(
        jnp.dot(h2.astype(bf), p["ws"].astype(bf), preferred_element_type=f32) + p["bs"],
        LOG_STD_MIN, LOG_STD_MAX)
    return mean, log_std


if __name__ == "__main__":
    key = jax.random.PRNGKey(0)
    k_params, k_state, k_big = jax.random.split(key, 3)

    batch = 2
    state_dim = 32
    action_dim = 8

    params = init_actor_params(k_params, state_dim, action_dim)
    packed = pack_actor_params(params)
    state = jax.random.normal(k_state, (batch, state_dim), jnp.float32)

    mean, log_std = actor_forward(state, packed)
    jax.block_until_ready((mean, log_std))

    assert mean.shape == (batch, action_dim)
    assert log_std.shape == (batch, action_dim)

    # Check vs a reference using the kernel's operand dtypes (output is bf16-quantized,
    # so allow ~1 bf16 ulp of relative error plus a small absolute floor).
    mean_bf, log_std_bf = actor_forward_ref_bf16(state, params)
    assert jnp.allclose(mean, mean_bf, atol=2e-2, rtol=2e-2)
    assert jnp.allclose(log_std, log_std_bf, atol=2e-2, rtol=2e-2)

    # Loose check vs the pure-f32 reference (bf16 weights + bf16 output ~1-2% error).
    mean_f32, log_std_f32 = actor_forward_ref_f32(state, params)
    assert jnp.allclose(mean, mean_f32, atol=5e-2, rtol=5e-2)
    assert jnp.allclose(log_std, log_std_f32, atol=5e-2, rtol=5e-2)

    # Larger, non-divisible batch exercises the ragged multi-step grid
    # (B=1537 -> tb=784, grid=(2,), last block partially out of bounds).
    big_b = 1537
    big_state = jax.random.normal(k_big, (big_b, state_dim), jnp.float32)
    mean_big, log_std_big = actor_forward(big_state, packed, tile_b=1024)
    jax.block_until_ready((mean_big, log_std_big))
    mb_ref, ls_ref = actor_forward_ref_bf16(big_state, params)
    assert mean_big.shape == (big_b, action_dim)
    assert log_std_big.shape == (big_b, action_dim)
    assert jnp.allclose(mean_big, mb_ref, atol=2e-2, rtol=2e-2)
    assert jnp.allclose(log_std_big, ls_ref, atol=2e-2, rtol=2e-2)

    print("KERNEL_OK")
</pallas_src>

<mosaic_0001>
module attributes {stable_mosaic.version = 11 : i64} {
  func.func @actor_kernel(%arg0: i32, %arg1: memref<16x32xf32, #tpu.memory_space<vmem>>, %arg2: memref<32x256xbf16, #tpu.memory_space<vmem>>, %arg3: memref<1x256xf32, #tpu.memory_space<vmem>>, %arg4: memref<256x128xbf16, #tpu.memory_space<vmem>>, %arg5: memref<1x128xf32, #tpu.memory_space<vmem>>, %arg6: memref<128x128xbf16, #tpu.memory_space<vmem>>, %arg7: memref<1x128xf32, #tpu.memory_space<vmem>>, %arg8: memref<1x128xf32, #tpu.memory_space<vmem>>, %arg9: memref<1x128xf32, #tpu.memory_space<vmem>>, %arg10: memref<16x128xbf16, #tpu.memory_space<vmem>>) attributes {dimension_semantics = [#tpu.dimension_semantics<parallel>], iteration_bounds = array<i64: 1>, scalar_prefetch = 0 : i64, scratch_operands = 0 : i64, tpu.core_type = #tpu.core_type<tc>, window_params = [{transform_indices = @transform_0, window_bounds = array<i64: 16, 32>}, {pipeline_mode = #tpu.pipeline_mode<synchronous>, transform_indices = @transform_1, window_bounds = array<i64: 32, 256>}, {pipeline_mode = #tpu.pipeline_mode<synchronous>, transform_indices = @transform_2, window_bounds = array<i64: 1, 256>}, {pipeline_mode = #tpu.pipeline_mode<synchronous>, transform_indices = @transform_3, window_bounds = array<i64: 256, 128>}, {pipeline_mode = #tpu.pipeline_mode<synchronous>, transform_indices = @transform_4, window_bounds = array<i64: 1, 128>}, {pipeline_mode = #tpu.pipeline_mode<synchronous>, transform_indices = @transform_5, window_bounds = array<i64: 128, 128>}, {pipeline_mode = #tpu.pipeline_mode<synchronous>, transform_indices = @transform_6, window_bounds = array<i64: 1, 128>}, {pipeline_mode = #tpu.pipeline_mode<synchronous>, transform_indices = @transform_7, window_bounds = array<i64: 1, 128>}, {pipeline_mode = #tpu.pipeline_mode<synchronous>, transform_indices = @transform_8, window_bounds = array<i64: 1, 128>}, {transform_indices = @transform_9, window_bounds = array<i64: 16, 128>}]} {
    %c0 = arith.constant 0 : index
    %c0_0 = arith.constant 0 : index
    %0 = vector.load %arg1[%c0, %c0_0] : memref<16x32xf32, #tpu.memory_space<vmem>>, vector<16x32xf32>
    %1 = arith.truncf %0 : vector<16x32xf32> to vector<16x32xbf16>
    %c0_1 = arith.constant 0 : index
    %c0_2 = arith.constant 0 : index
    %2 = vector.load %arg2[%c0_1, %c0_2] : memref<32x256xbf16, #tpu.memory_space<vmem>>, vector<32x256xbf16>
    %cst = arith.constant dense<0.000000e+00> : vector<16x256xf32>
    %3 = tpu.matmul %1, %2, %cst {dimension_numbers = #tpu.dot_dimension_numbers<[1], [0], [0], [1], [0, 0, 1, 1], [], []>} : vector<16x32xbf16>, vector<32x256xbf16>, vector<16x256xf32> -> vector<16x256xf32>
    %c0_3 = arith.constant 0 : index
    %c0_4 = arith.constant 0 : index
    %4 = vector.load %arg3[%c0_3, %c0_4] : memref<1x256xf32, #tpu.memory_space<vmem>>, vector<1x256xf32>
    %5 = vector.broadcast %4 : vector<1x256xf32> to vector<16x256xf32>
    %6 = arith.addf %3, %5 : vector<16x256xf32>
    %cst_5 = arith.constant 0.000000e+00 : f32
    %7 = vector.broadcast %cst_5 : f32 to vector<16x256xf32>
    %8 = arith.maximumf %6, %7 : vector<16x256xf32>
    %9 = arith.truncf %8 : vector<16x256xf32> to vector<16x256xbf16>
    %c0_6 = arith.constant 0 : index
    %c0_7 = arith.constant 0 : index
    %10 = vector.load %arg4[%c0_6, %c0_7] : memref<256x128xbf16, #tpu.memory_space<vmem>>, vector<256x128xbf16>
    %cst_8 = arith.constant dense<0.000000e+00> : vector<16x128xf32>
    %11 = tpu.matmul %9, %10, %cst_8 {dimension_numbers = #tpu.dot_dimension_numbers<[1], [0], [0], [1], [0, 0, 1, 1], [], []>} : vector<16x256xbf16>, vector<256x128xbf16>, vector<16x128xf32> -> vector<16x128xf32>
    %c0_9 = arith.constant 0 : index
    %c0_10 = arith.constant 0 : index
    %12 = vector.load %arg5[%c0_9, %c0_10] : memref<1x128xf32, #tpu.memory_space<vmem>>, vector<1x128xf32>
    %13 = vector.broadcast %12 : vector<1x128xf32> to vector<16x128xf32>
    %14 = arith.addf %11, %13 : vector<16x128xf32>
    %cst_11 = arith.constant 0.000000e+00 : f32
    %15 = vector.broadcast %cst_11 : f32 to vector<16x128xf32>
    %16 = arith.maximumf %14, %15 : vector<16x128xf32>
    %17 = arith.truncf %16 : vector<16x128xf32> to vector<16x128xbf16>
    %c0_12 = arith.constant 0 : index
    %c0_13 = arith.constant 0 : index
    %18 = vector.load %arg6[%c0_12, %c0_13] : memref<128x128xbf16, #tpu.memory_space<vmem>>, vector<128x128xbf16>
    %cst_14 = arith.constant dense<0.000000e+00> : vector<16x128xf32>
    %19 = tpu.matmul %17, %18, %cst_14 {dimension_numbers = #tpu.dot_dimension_numbers<[1], [0], [0], [1], [0, 0, 1, 1], [], []>} : vector<16x128xbf16>, vector<128x128xbf16>, vector<16x128xf32> -> vector<16x128xf32>
    %c0_15 = arith.constant 0 : index
    %c0_16 = arith.constant 0 : index
    %20 = vector.load %arg7[%c0_15, %c0_16] : memref<1x128xf32, #tpu.memory_space<vmem>>, vector<1x128xf32>
    %21 = vector.broadcast %20 : vector<1x128xf32> to vector<16x128xf32>
    %22 = arith.addf %19, %21 : vector<16x128xf32>
    %c0_17 = arith.constant 0 : index
    %c0_18 = arith.constant 0 : index
    %23 = vector.load %arg8[%c0_17, %c0_18] : memref<1x128xf32, #tpu.memory_space<vmem>>, vector<1x128xf32>
    %24 = vector.broadcast %23 : vector<1x128xf32> to vector<16x128xf32>
    %25 = arith.maximumf %22, %24 : vector<16x128xf32>
    %c0_19 = arith.constant 0 : index
    %c0_20 = arith.constant 0 : index
    %26 = vector.load %arg9[%c0_19, %c0_20] : memref<1x128xf32, #tpu.memory_space<vmem>>, vector<1x128xf32>
    %27 = vector.broadcast %26 : vector<1x128xf32> to vector<16x128xf32>
    %28 = arith.minimumf %25, %27 : vector<16x128xf32>
    %29 = arith.truncf %28 : vector<16x128xf32> to vector<16x128xbf16>
    %c0_21 = arith.constant 0 : index
    %c0_22 = arith.constant 0 : index
    %30 = vector.load %arg10[%c0_21, %c0_22] : memref<16x128xbf16, #tpu.memory_space<vmem>>, vector<16x128xbf16>
    tpu.vector_store %arg10[%c0_21, %c0_22], %29 {strides = array<i32>} : memref<16x128xbf16, #tpu.memory_space<vmem>>, vector<16x128xbf16>,
    return
  }
  func.func @transform_0(%arg0: i32) -> (i32, i32) {
    %c0_i32 = arith.constant 0 : i32
    %c0_i32_0 = arith.constant 0 : i32
    return %arg0, %c0_i32 : i32, i32
  }
  func.func @transform_1(%arg0: i32) -> (i32, i32) {
    %c0_i32 = arith.constant 0 : i32
    %c0_i32_0 = arith.constant 0 : i32
    %c0_i32_1 = arith.constant 0 : i32
    return %c0_i32, %c0_i32_0 : i32, i32
  }
  func.func @transform_2(%arg0: i32) -> (i32, i32) {
    %c0_i32 = arith.constant 0 : i32
    %c0_i32_0 = arith.constant 0 : i32
    %c0_i32_1 = arith.constant 0 : i32
    return %c0_i32, %c0_i32_0 : i32, i32
  }
  func.func @transform_3(%arg0: i32) -> (i32, i32) {
    %c0_i32 = arith.constant 0 : i32
    %c0_i32_0 = arith.constant 0 : i32
    %c0_i32_1 = arith.constant 0 : i32
    return %c0_i32, %c0_i32_0 : i32, i32
  }
  func.func @transform_4(%arg0: i32) -> (i32, i32) {
    %c0_i32 = arith.constant 0 : i32
    %c0_i32_0 = arith.constant 0 : i32
    %c0_i32_1 = arith.constant 0 : i32
    return %c0_i32, %c0_i32_0 : i32, i32
  }
  func.func @transform_5(%arg0: i32) -> (i32, i32) {
    %c0_i32 = arith.constant 0 : i32
    %c0_i32_0 = arith.constant 0 : i32
    %c0_i32_1 = arith.constant 0 : i32
    return %c0_i32, %c0_i32_0 : i32, i32
  }
  func.func @transform_6(%arg0: i32) -> (i32, i32) {
    %c0_i32 = arith.constant 0 : i32
    %c0_i32_0 = arith.constant 0 : i32
    %c0_i32_1 = arith.constant 0 : i32
    return %c0_i32, %c0_i32_0 : i32, i32
  }
  func.func @transform_7(%arg0: i32) -> (i32, i32) {
    %c0_i32 = arith.constant 0 : i32
    %c0_i32_0 = arith.constant 0 : i32
    %c0_i32_1 = arith.constant 0 : i32
    return %c0_i32, %c0_i32_0 : i32, i32
  }
  func.func @transform_8(%arg0: i32) -> (i32, i32) {
    %c0_i32 = arith.constant 0 : i32
    %c0_i32_0 = arith.constant 0 : i32
    %c0_i32_1 = arith.constant 0 : i32
    return %c0_i32, %c0_i32_0 : i32, i32
  }
  func.func @transform_9(%arg0: i32) -> (i32, i32) {
    %c0_i32 = arith.constant 0 : i32
    %c0_i32_0 = arith.constant 0 : i32
    return %arg0, %c0_i32 : i32, i32
  }
}

</mosaic_0001>

<bundles_post_ra>
// kernel: tpu_custom_call.1
= control target key start
LH: loop header
LB: loop body
LE: loop exit
PB: predicated region body
PF: predicated region fallthrough
CT: control target
= control target key end

     0   :  { %14 = vsyncpa [#allocation3], 0  ;;  %s923_s0 = inlined_call_operand.hbm [shape: f32[2,32], index: 0, kind: input, shape index: {}]   ;;  %s924_s1 = inlined_call_operand.hbm [shape: bf16[32,256], index: 1, kind: input, shape index: {}]   ;;  %s925_s2 = inlined_call_operand.hbm [shape: f32[1,256], index: 2, kind: input, shape index: {}]   ;;  %s926_s3 = inlined_call_operand.hbm [shape: bf16[256,128], index: 3, kind: input, shape index: {}]   ;;  %s927_s4 = inlined_call_operand.vmem [shape: f32[1,128], index: 4, kind: input, shape index: {}]   ;;  %s928_s5 = inlined_call_operand.hbm [shape: bf16[128,128], index: 5, kind: input, shape index: {}]   ;;  %s929_s6 = inlined_call_operand.vmem [shape: f32[1,128], index: 6, kind: input, shape index: {}]   ;;  %s930_s7 = inlined_call_operand.vmem [shape: f32[1,128], index: 7, kind: input, shape index: {}]   ;;  %s931_s8 = inlined_call_operand.vmem [shape: f32[1,128], index: 8, kind: input, shape index: {}]   ;;  %s932_s9 = inlined_call_operand.hbm [shape: bf16[2,128], index: 9, kind: output, shape index: {}]  }
   0x1   :  { %15 = vsyncpa [#allocation6], 0 }
   0x2   :  { %16 = vsyncpa [#allocation9], 0 }
   0x3   :  { %17 = vsyncpa [#allocation4], 0  ;;  %s35_s11 = sshll.u32 %s924_s1, 4  ;;  %s36_s11 = int_to_ptr.hbm [resolvable:$true] %s35_s11 }
   0x4   :  { %21 = vsyncadd [#allocation3], 224  ;;  %s821_s12 = smov [#allocation5]   ;;  %s59_s16 = sshll.u32 %s926_s3, 4  ;;  %s60_s16 = int_to_ptr.hbm [resolvable:$true] %s59_s16 }
   0x5   :  { %s37_s13 = sshll.u32 %s821_s12, 4  ;;  %s822_s17 = smov 128   ;;  %s38_s13 = int_to_ptr.vmem [resolvable:$true] %s37_s13 }
   0x6   :  { %s823_s18 = smov 8   ;;  %s824_s19 = smov [#allocation8]  }
   0x7   :  { %43 = dma.hbm_to_vmem [thread:$0]  %s36_s11, 512, %s38_s13, [#allocation6], %s822_s17, %s822_s17, %s823_s18  }
   0x8   :  { %s61_s20 = sshll.u32 %s824_s19, 4  ;;  %s825_s21 = smov 64   ;;  %s62_s20 = int_to_ptr.vmem [resolvable:$true] %s61_s20 }
   0x9   :  { %s826_s22 = smov 4   ;;  %s22_s24 = sshll.u32 %s923_s0, 4  ;;  %s23_s24 = int_to_ptr.hbm [resolvable:$true] %s22_s24 }
   0xa   :  { %67 = dma.hbm_to_vmem [thread:$0]  %s60_s16, 2048, %s62_s20, [#allocation9], %s825_s21, %s825_s21, %s826_s22  }
   0xb   :  { %s827_s25 = smov [#allocation2]   ;;  %s49_s28 = sshll.u32 %s925_s2, 4  ;;  %s50_s28 = int_to_ptr.hbm [resolvable:$true] %s49_s28 }
   0xc   :  { %s24_s26 = sshll.u32 %s827_s25, 4  ;;  %s828_s29 = smov 32   ;;  %s25_s26 = int_to_ptr.vmem [resolvable:$true] %s24_s26 }
   0xd   :  { %s829_s30 = smov 2   ;;  %s830_s10 = smov [#allocation7]  }
   0xe   :  { %30 = dma.hbm_to_vmem [thread:$0]  %s23_s24, 32, %s25_s26, [#allocation3], %s828_s29, %s828_s29, %s829_s30  }
   0xf   :  { %s51_s11 = sshll.u32 %s830_s10, 4  ;;  %s74_s14 = sshll.u32 %s928_s5, 4  ;;  %s52_s11 = int_to_ptr.vmem [resolvable:$true] %s51_s11  ;;  %s75_s14 = int_to_ptr.hbm [resolvable:$true] %s74_s14 }
  0x10   :  { %54 = dma.hbm_to_vmem [thread:$0]  %s50_s28, 32, %s52_s11, [#allocation6]  }
  0x11   :  { %s831_s0 = smov [#allocation10]  }
  0x12   :  { %s76_s15 = sshll.u32 %s831_s0, 4  ;;  %s77_s15 = int_to_ptr.vmem [resolvable:$true] %s76_s15 }
  0x13   :  { %82 = dma.hbm_to_vmem [thread:$0]  %s75_s14, 1024, %s77_s15, [#allocation9], %s825_s21, %s825_s21, %s826_s22  }
  0x14   :  { %813 = dma.done.wait [#allocation3], 256  }
  0x15   :  { %814 = vsyncadd [#allocation3], 4294967040 }
  0x16   :  { %815 = dma.done.wait [#allocation6], 544  }
  0x17   :  { %816 = vsyncadd [#allocation6], 4294966752 }
  0x18   :  { %817 = dma.done.wait [#allocation9], 3072  }
  0x19   :  { %818 = vsyncadd [#allocation9], 4294964224  ;;  %v519_v0 = vld [vmem:[#allocation5 + $0x10] sm:$0xf]  ;;  %v626_v1 = vld [vmem:[#allocation5 + $0x14] sm:$0xf0] }
  0x1a   :  { %v511_v2 = vld [vmem:[#allocation5] sm:$0xf]  ;;  %v520_v3 = vor.u32 %v626_v1, %v519_v0  ;;  %v624_v4 = vld [vmem:[#allocation5 + $0x4] sm:$0xf0]  ;;  %v625_v5 = vld [vmem:[#allocation5 + $0x14] sm:$0xf] }
  0x1b   :  { %v521_v6 = vld [vmem:[#allocation5 + $0x18] sm:$0xf0]  ;;  %v512_v7 = vor.u32 %v624_v4, %v511_v2  ;;  %v110_v8 = vld [vmem:[#allocation2] sm:$0xff]  ;;  %v623_v12 = vld [vmem:[#allocation5 + $0x4] sm:$0xf]  ;;  %vm143_vm0 = vcmask 261120  }
  0x1c   :  { %153 = vmatpush.bf16.msra.mxu1 %v520_v3  ;;  %v111_v9 = vld [vmem:[#allocation2 + $0x8] sm:$0xff]  ;;  %v524_v11 = vor.u32 %v625_v5, %v521_v6  ;;  %v513_v13 = vld [vmem:[#allocation5 + $0x8] sm:$0xf0]  ;;  %v631_v18 = vld [vmem:[#allocation8 + $0x20] sm:$0xff]  ;;  %vm444_vm1 = vcmask 1040384   ;;  %vm448_vm2 = vcmask 1041409  }
  0x1d   :  { %v634_v10 = vld [vmem:[#allocation8 + $0x38] sm:$0xff]  ;;  %v633_v14 = vld [vmem:[#allocation8 + $0x30] sm:$0xff]  ;;  %v112_v15 = vpack.c.bf16 %v111_v9, %v110_v8  ;;  %v516_v16 = vor.u32 %v623_v12, %v513_v13  ;;  %v632_v17 = vld [vmem:[#allocation8 + $0x28] sm:$0xff]  ;;  %vm452_vm3 = vcmask 1042434   ;;  %vm456_vm4 = vcmask 1043459  }
  0x1e   :  { %313 = vmatpush.bf16.msra.mxu2 %v634_v10  ;;  %v630_v19 = vld [vmem:[#allocation8 + $0x18] sm:$0xff]  ;;  %v629_v21 = vld [vmem:[#allocation8 + $0x10] sm:$0xff]  ;;  %v628_v23 = vld [vmem:[#allocation8 + $0x8] sm:$0xff] }
  0x1f   :  { %v642_v20 = vld [vmem:[#allocation8 + $0x78] sm:$0xff]  ;;  %v641_v22 = vld [vmem:[#allocation8 + $0x70] sm:$0xff]  ;;  %v640_v24 = vld [vmem:[#allocation8 + $0x68] sm:$0xff] }
  0x20   :  { %154 = vmatpush.bf16.msra.mxu1 %v512_v7  ;;  %327 = vmatpush.bf16.msra.mxu3 %v642_v20  ;;  %v627_v25 = vld [vmem:[#allocation8] sm:$0xff]  ;;  %v638_v27 = vld [vmem:[#allocation8 + $0x58] sm:$0xff]  ;;  %v637_v28 = vld [vmem:[#allocation8 + $0x50] sm:$0xff] }
  0x21   :  { %v639_v26 = vld [vmem:[#allocation8 + $0x60] sm:$0xff]  ;;  %v636_v29 = vld [vmem:[#allocation8 + $0x48] sm:$0xff]  ;;  %v117_v31 = vld [vmem:[#allocation7] sm:$0x3] }
  0x22   :  { %314 = vmatpush.bf16.msra.mxu2 %v633_v14  ;;  %v635_v30 = vld [vmem:[#allocation8 + $0x40] sm:$0xff]  ;;  %v119_v33 = vperm.slane %v117_v31, 0  ;;  %v120_v41 = vperm.slane %v117_v31, 1  ;;  %v650_v48 = vld [vmem:[#allocation10 + $0x38] sm:$0xff]  ;;  %v649_v49 = vld [vmem:[#allocation10 + $0x30] sm:$0xff] }
  0x23   :  { %525 = vmatmul.msk.bf16.vlgmr.msra.gmra.mxu1 %vm143_vm0, %v112_v15  ;;  %412 = vmatpush.bf16.msra.mxu0 %v650_v48  ;;  %v648_v50 = vld [vmem:[#allocation10 + $0x28] sm:$0xff]  ;;  %v647_v51 = vld [vmem:[#allocation10 + $0x20] sm:$0xff]  ;;  %v646_v52 = vld [vmem:[#allocation10 + $0x18] sm:$0xff] }
  0x24   :  { %167 = vmatpush.bf16.msrb.mxu1 %v524_v11  ;;  %328 = vmatpush.bf16.msra.mxu3 %v641_v22  ;;  %v645_v53 = vld [vmem:[#allocation10 + $0x10] sm:$0xff]  ;;  %v644_v54 = vld [vmem:[#allocation10 + $0x8] sm:$0xff]  ;;  %v643_v55 = vld [vmem:[#allocation10] sm:$0xff] }
  0x25   :  { %v665_v58 = vld [vmem:[%s927_s4] ss:$0 sm:$0xff] }
  0x26   :  { %315 = vmatpush.bf16.msra.mxu2 %v632_v17  ;;  %v666_v4 = vld [vmem:[%s929_s6] ss:$0 sm:$0xff] }
  0x27   :  { %413 = vmatpush.bf16.msra.mxu0 %v649_v49  ;;  %v667_v5 = vld [vmem:[%s930_s7] ss:$0 sm:$0xff] }
  0x28   :  { %168 = vmatpush.bf16.msrb.mxu1 %v516_v16  ;;  %329 = vmatpush.bf16.msra.mxu3 %v640_v24  ;;  %v668_v8 = vld [vmem:[%s931_s8] ss:$0 sm:$0xff] }
  0x2a   :  { %316 = vmatpush.bf16.msra.mxu2 %v631_v18 }
  0x2b   :  { %414 = vmatpush.bf16.msra.mxu0 %v648_v50 }
  0x2c   :  { %330 = vmatpush.bf16.msra.mxu3 %v639_v26 }
  0x2e   :  { %317 = vmatpush.bf16.msra.mxu2 %v630_v19 }
  0x2f   :  { %415 = vmatpush.bf16.msra.mxu0 %v647_v51 }
  0x30   :  { %331 = vmatpush.bf16.msra.mxu3 %v638_v27 }
  0x32   :  { %318 = vmatpush.bf16.msra.mxu2 %v629_v21 }
  0x33   :  { %526 = vmatmul.msk.bf16.vlgmr.msrb.gmra.mxu1 %vm143_vm0, %v112_v15  ;;  %416 = vmatpush.bf16.msra.mxu0 %v646_v52 }
  0x34   :  { %332 = vmatpush.bf16.msra.mxu3 %v637_v28 }
  0x36   :  { %319 = vmatpush.bf16.msra.mxu2 %v628_v23 }
  0x37   :  { %417 = vmatpush.bf16.msra.mxu0 %v645_v53 }
  0x38   :  { %333 = vmatpush.bf16.msra.mxu3 %v636_v29 }
  0x3a   :  { %320 = vmatpush.bf16.msra.mxu2 %v627_v25 }
  0x3b   :  { %418 = vmatpush.bf16.msra.mxu0 %v644_v54 }
  0x3c   :  { %334 = vmatpush.bf16.msra.mxu3 %v635_v30 }
  0x3f   :  { %419 = vmatpush.bf16.msra.mxu0 %v643_v55 }
  0xa0   :  { %v156_v32 = vpop.f32.mrf.mxu1 }
  0xa1   :  { %v157_v34 = vadd.f32 %v156_v32, %v119_v33 }
  0xa3   :  { %v175_v37 = vmax.f32 %v157_v34, 0.0 }
  0xa8   :  { %v158_v35 = vpop.f32.mrf.mxu1 }
  0xa9   :  { %v159_v36 = vadd.f32 %v158_v35, %v119_v33 }
  0xab   :  { %v177_v38 = vmax.f32 %v159_v36, 0.0 }
  0xad   :  { %v179_v39 = vpack.c.bf16 %v177_v38, %v175_v37 }
  0xaf   :  { %321 = vmatmul.bf16.vlgmr.msra.gmra.mxu2 %v179_v39 }
  0xb0   :  { %v170_v40 = vpop.f32.mrf.mxu1 }
  0xb1   :  { %v171_v42 = vadd.f32 %v170_v40, %v120_v41 }
  0xb3   :  { %v176_v45 = vmax.f32 %v171_v42, 0.0 }
  0xb8   :  { %v172_v43 = vpop.f32.mrf.mxu1 }
  0xb9   :  { %v173_v44 = vadd.f32 %v172_v43, %v120_v41 }
  0xbb   :  { %v178_v46 = vmax.f32 %v173_v44, 0.0 }
  0xbd   :  { %v180_v47 = vpack.c.bf16 %v178_v46, %v176_v45 }
  0xbf   :  { %335 = vmatmul.bf16.vlgmr.msra.gmra.mxu3 %v180_v47 }
 0x132   :  { %v322_v56 = vpop.f32.mrf.mxu2 }
 0x133   :  { %v323_v60 = vadd.f32 %v665_v58, %v322_v56 }
 0x13a   :  { %v324_v59 = vpop.f32.mrf.mxu2 }
 0x13b   :  { %v325_v61 = vadd.f32 %v665_v58, %v324_v59 }
 0x142   :  { %v336_v57 = vpop.f32.mrf.mxu3 }
 0x143   :  { %v337_v62 = vadd.f32 %v336_v57, %v323_v60 }
 0x145   :  { %v341_v1 = vmax.f32 %v337_v62, 0.0 }
 0x14a   :  { %v338_v63 = vpop.f32.mrf.mxu3 }
 0x14b   :  { %v339_v0 = vadd.f32 %v338_v63, %v325_v61 }
 0x14d   :  { %v342_v2 = vmax.f32 %v339_v0, 0.0 }
 0x14f   :  { %v343_v3 = vpack.c.bf16 %v342_v2, %v341_v1 }
 0x151   :  { %420 = vmatmul.bf16.vlgmr.msra.gmra.mxu0 %v343_v3 }
 0x1ce   :  { %v421_v6 = vpop.f32.mrf.mxu0 }
 0x1cf   :  { %v422_v7 = vadd.f32 %v666_v4, %v421_v6 }
 0x1d1   :  { %v430_v9 = vmax.f32 %v422_v7, %v667_v5 }
 0x1d3   :  { %v436_v10 = vmin.f32 %v430_v9, %v668_v8 }
 0x1d5   :  { %v438_v11 = vpack.c.bf16 %v436_v10, %v436_v10 }
 0x1d6   :  { %v423_v12 = vpop.f32.mrf.mxu0 }
 0x1d7   :  { %v442_v13 = vrot.slane %v438_v11, 3  ;;  %v424_v14 = vadd.f32 %v666_v4, %v423_v12 }
 0x1d9   :  { %v447_v15 = vsel %vm444_vm1, %v438_v11, %v442_v13  ;;  %v449_v16 = vsel %vm448_vm2, %v438_v11, %v442_v13  ;;  %v453_v17 = vsel %vm452_vm3, %v438_v11, %v442_v13  ;;  %v457_v18 = vsel %vm456_vm4, %v438_v11, %v442_v13 }
 0x1da   :  { %v451_v19 = vrot.slane %v449_v16, 1  ;;  %v455_v20 = vrot.slane %v453_v17, 2  ;;  %v459_v21 = vrot.slane %v457_v18, 3  ;;  %480 = vst [vmem:[#allocation11] sm:$0x1] %v447_v15  ;;  %v431_v22 = vmax.f32 %v424_v14, %v667_v5 }
 0x1dc   :  { %481 = vst [vmem:[#allocation11 + $0x1] sm:$0x1] %v451_v19  ;;  %v437_v23 = vmin.f32 %v431_v22, %v668_v8 }
 0x1dd   :  { %482 = vst [vmem:[#allocation11 + $0x2] sm:$0x1] %v455_v20 }
 0x1de   :  { %483 = vst [vmem:[#allocation11 + $0x3] sm:$0x1] %v459_v21  ;;  %v439_v24 = vpack.c.bf16 %v437_v23, %v437_v23 }
 0x1e0   :  { %v443_v25 = vrot.slane %v439_v24, 3 }
 0x1e2   :  { %v462_v26 = vsel %vm444_vm1, %v439_v24, %v443_v25  ;;  %v463_v27 = vsel %vm448_vm2, %v439_v24, %v443_v25  ;;  %v466_v28 = vsel %vm452_vm3, %v439_v24, %v443_v25  ;;  %v469_v29 = vsel %vm456_vm4, %v439_v24, %v443_v25 }
 0x1e3   :  { %v465_v30 = vrot.slane %v463_v27, 1  ;;  %v468_v31 = vrot.slane %v466_v28, 2  ;;  %v471_v32 = vrot.slane %v469_v29, 3  ;;  %484 = vst [vmem:[#allocation11 + $0x4] sm:$0x1] %v462_v26 }
 0x1e5   :  { %485 = vst [vmem:[#allocation11 + $0x5] sm:$0x1] %v465_v30 }
 0x1e6   :  { %486 = vst [vmem:[#allocation11 + $0x6] sm:$0x1] %v468_v31 }
 0x1e7   :  { %487 = vst [vmem:[#allocation11 + $0x7] sm:$0x1] %v471_v32 }
 0x1e8   :  { %491 = vsyncadd [#allocation4], 112  ;;  %s494_s8 = sshll.u32 %s932_s9, 4  ;;  %s832_s21 = smov [#allocation11]   ;;  %s495_s8 = int_to_ptr.hbm [resolvable:$true] %s494_s8 }
 0x1e9   :  { %s492_s22 = sshll.u32 %s832_s21, 4  ;;  %s833_s1 = smov 16   ;;  %s493_s22 = int_to_ptr.vmem [resolvable:$true] %s492_s22 }
 0x1ea   :  { %s834_s23 = smov 1  }
 0x1eb   :  { %500 = dma.vmem_to_hbm [thread:$0]  %s493_s22, 16, %s495_s8, [#allocation4], %s833_s1, %s833_s1, %s834_s23  }
 0x1ec   :  { %819 = dma.done.wait [#allocation4], 128  }
 0x1ed   :  { %820 = vsyncadd [#allocation4], 4294967168 }
 0x1ee   :  { %505 = vsyncpa [#allocation3], 1 }
 0x1ef   :  { %506 = vsyncpa [#allocation6], 1 }
 0x1f0   :  { %507 = vsyncpa [#allocation9], 1 }
 0x1f1   :  { %508 = vsyncpa [#allocation4], 1 }

</bundles_post_ra>
